<compile_context>
chip_gen: v6e
topology: v6e:2x2x1
jax: 0.10.0
libtpu: 0.0.40
codegen_flags: <defaults>
</compile_context>

<pallas_src>
import functools

import jax
import jax.numpy as jnp
from jax.experimental import pallas as pl
from jax.experimental.pallas import tpu as pltpu


F_P = 128  # padded feature width (lane dimension)


def _round_up(x, m):
    return ((x + m - 1) // m) * m


def _pick_tm(n_pad):
    """Largest row-tile dividing n_pad whose double-buffered bf16 A_hat tile
    stays within a v7x-friendly VMEM budget."""
    budget = 16 * 1024 * 1024
    for tm in (1024, 512, 256, 128):
        if n_pad % tm == 0 and 2 * tm * n_pad * 2 <= budget:
            return tm
    return 128


def gcn_kernel(a_ref, x_hbm_ref, w_ref, b_ref, p_ref, o_ref,
               h_bufs, g_acc, copy_sem, *, mt, tm, out_c):
    """Grid = (layer, m).  Per (layer L, row-tile m):
         Z_m = A_hat[m rows, :] @ H_prev         (bf16 x bf16 MXU, f32 acc)
         H_m = Z_m @ W_L + b_L
         L < 2 : H_next[m rows] = relu(H_m)      (bf16 ping-pong scratch)
         L == 2: g_acc += P[:, m cols] @ H_m ; log_softmax at the last tile
    """
    layer = pl.program_id(0)
    m = pl.program_id(1)

    # One-time: DMA the lane-padded bf16 node features into ping buffer 0.
    @pl.when((layer == 0) & (m == 0))
    def _():
        cp = pltpu.make_async_copy(x_hbm_ref, h_bufs.at[0], copy_sem)
        cp.start()
        cp.wait()

    # Zero the pooled-logits accumulator at the start of the last layer.
    @pl.when((layer == 2) & (m == 0))
    def _():
        g_acc[...] = jnp.zeros_like(g_acc)

    src = layer & 1          # layers 0,2 read buffer 0; layer 1 reads buffer 1
    dst = (layer + 1) & 1

    h_prev = h_bufs[src]                                   # [n_pad, F_P] bf16
    # Z_m = A_hat row tile @ H_prev    (bf16 operands, f32 accumulation)
    z = jnp.dot(a_ref[...], h_prev, preferred_element_type=jnp.float32)
    # H_m = Z_m @ W_L + b_L            (bf16 x bf16 MXU, f32 accumulation)
    h = jnp.dot(z.astype(jnp.bfloat16), w_ref[0],
                preferred_element_type=jnp.float32) + b_ref[0]

    row = pl.multiple_of(m * tm, tm)

    @pl.when(layer < 2)
    def _():
        h_bufs[dst, pl.ds(row, tm), :] = jnp.maximum(h, 0.0).astype(jnp.bfloat16)

    @pl.when(layer == 2)
    def _():
        # global mean pool contribution of this row tile (f32 accumulation)
        g_acc[...] += jnp.dot(p_ref[...], h.astype(jnp.bfloat16),
                              preferred_element_type=jnp.float32)

        @pl.when(m == mt - 1)
        def _():
            # dropout(p=0.5) in eval mode is identity.
            # TODO(synk): training-mode dropout (scaled Bernoulli mask) not implemented.
            g = g_acc[...]
            col = jax.lax.broadcasted_iota(jnp.int32, g.shape, 1)
            g = jnp.where(col < out_c, g, jnp.float32(-1e30))  # mask padded classes
            mmax = jnp.max(g, axis=-1, keepdims=True)
            zc = g - mmax
            lse = jnp.log(jnp.sum(jnp.exp(zc), axis=-1, keepdims=True))
            o_ref[...] = zc - lse


def gcn_forward(x, edge_index, batch, params, num_graphs):
    """x: [N, in_c] f32, edge_index: [2, E] int32, batch: [N] int32."""
    N, in_c = x.shape
    (w1, b1), (w2, b2), (w3, b3) = params
    hid = w1.shape[1]
    out_c = w3.shape[1]
    assert max(in_c, hid, out_c) <= F_P
    # TODO(synk): feature widths > 128 would need an extra feature-tile grid axis.

    n_pad = _round_up(N, 128)
    tm = _pick_tm(n_pad)
    mt = n_pad // tm
    g_pad = _round_up(max(num_graphs, 1), 8)

    # ---- A_hat = D^-1/2 (A + I) D^-1/2, padded, bf16 (the dominant byte stream) ----
    A = jnp.zeros((N, N), jnp.float32).at[edge_index[0], edge_index[1]].add(1.0)
    A = jnp.minimum(A, 1.0)                      # dedupe parallel edges
    A = A + jnp.eye(N, dtype=jnp.float32)        # add self loops
    deg = jnp.sum(A, axis=1)
    dinv = jnp.where(deg > 0, 1.0 / jnp.sqrt(deg), 0.0)
    A_hat = A * dinv[:, None] * dinv[None, :]
    A_hat = jnp.zeros((n_pad, n_pad), jnp.float32).at[:N, :N].set(A_hat)
    A_hat = A_hat.astype(jnp.bfloat16)

    # ---- node features: lane-padded, bf16, left in HBM (one manual DMA) ----
    x_pad = jnp.zeros((n_pad, F_P), jnp.float32).at[:N, :in_c].set(x)
    x_pad = x_pad.astype(jnp.bfloat16)

    # ---- weights zero-padded to [F_P, F_P], bf16, stacked per layer ----
    def pad_w(w):
        return jnp.zeros((F_P, F_P), jnp.float32).at[:w.shape[0], :w.shape[1]].set(w)

    def pad_b(b):
        b2d = b.reshape(1, -1)
        return jnp.zeros((1, F_P), jnp.float32).at[:, :b2d.shape[1]].set(b2d)

    w_stack = jnp.stack([pad_w(w1), pad_w(w2), pad_w(w3)]).astype(jnp.bfloat16)
    b_stack = jnp.stack([pad_b(b1), pad_b(b2), pad_b(b3)])          # f32, tiny

    # ---- mean-pooling matrix P [g_pad, n_pad] in bf16 (entries exact) ----
    onehot = (batch[None, :] == jnp.arange(num_graphs)[:, None]).astype(jnp.float32)
    counts = jnp.sum(onehot, axis=1, keepdims=True)
    P = onehot / jnp.maximum(counts, 1.0)
    P = jnp.zeros((g_pad, n_pad), jnp.float32).at[:num_graphs, :N].set(P)
    P = P.astype(jnp.bfloat16)

    kernel = functools.partial(gcn_kernel, mt=mt, tm=tm, out_c=out_c)

    flops = int(3 * 2 * n_pad * n_pad * F_P          # A_hat @ H per layer
                + 3 * 2 * n_pad * F_P * F_P          # (A H) @ W per layer
                + 2 * g_pad * n_pad * F_P)           # pooling matmul
    bytes_accessed = int(3 * n_pad * n_pad * 2       # A_hat streamed once per layer
                         + n_pad * F_P * 2           # x (one DMA)
                         + 3 * F_P * F_P * 2 + 3 * F_P * 4
                         + 3 * g_pad * n_pad * 2     # P streamed per layer
                         + g_pad * F_P * 4)

    out = pl.pallas_call(
        kernel,
        out_shape=jax.ShapeDtypeStruct((g_pad, F_P), jnp.float32),
        grid_spec=pltpu.PrefetchScalarGridSpec(
            num_scalar_prefetch=0,
            grid=(3, mt),
            in_specs=[
                # A_hat: contiguous row tiles (only operand streamed per step)
                pl.BlockSpec((tm, n_pad), lambda l, m: (m, 0)),
                # node features stay in HBM; one manual DMA at (layer=0, m=0)
                pl.BlockSpec(memory_space=pl.ANY),
                # per-layer weight / bias selected by the layer grid index
                pl.BlockSpec((1, F_P, F_P), lambda l, m: (l, 0, 0)),
                pl.BlockSpec((1, 1, F_P), lambda l, m: (l, 0, 0)),
                # pooling matrix: column tiles matched to the A_hat row tiles
                pl.BlockSpec((g_pad, tm), lambda l, m: (0, m)),
            ],
            out_specs=pl.BlockSpec((g_pad, F_P), lambda l, m: (0, 0)),
            scratch_shapes=[
                pltpu.VMEM((2, n_pad, F_P), jnp.bfloat16),   # ping-pong activations
                pltpu.VMEM((g_pad, F_P), jnp.float32),       # pooled-logit accumulator
                pltpu.SemaphoreType.DMA(()),                 # x -> VMEM one-shot copy
            ],
        ),
        compiler_params=pltpu.CompilerParams(
            # Both axes carry state in VMEM scratch across steps -> sequential.
            # TODO(synk): splitting row tiles across v7x's 2 TCs would need an
            # HBM round-trip of H between layers (not done here).
            dimension_semantics=("arbitrary", "arbitrary"),
            vmem_limit_bytes=48 * 1024 * 1024,
        ),
        cost_estimate=pl.CostEstimate(flops=flops,
                                      transcendentals=int(g_pad * F_P),
                                      bytes_accessed=bytes_accessed),
    )(A_hat, x_pad, w_stack, b_stack, P)

    return out[:num_graphs, :out_c]


def gcn_reference(x, edge_index, batch, params, num_graphs):
    """Plain-JAX f32 reference of the same forward pass (for validation)."""
    N = x.shape[0]
    A = jnp.zeros((N, N), jnp.float32).at[edge_index[0], edge_index[1]].add(1.0)
    A = jnp.minimum(A, 1.0) + jnp.eye(N, dtype=jnp.float32)
    deg = jnp.sum(A, axis=1)
    dinv = jnp.where(deg > 0, 1.0 / jnp.sqrt(deg), 0.0)
    A_hat = A * dinv[:, None] * dinv[None, :]
    (w1, b1), (w2, b2), (w3, b3) = params
    h = jnp.maximum(A_hat @ (x @ w1) + b1, 0.0)
    h = jnp.maximum(A_hat @ (h @ w2) + b2, 0.0)
    h = A_hat @ (h @ w3) + b3
    onehot = (batch[None, :] == jnp.arange(num_graphs)[:, None]).astype(jnp.float32)
    g = (onehot @ h) / jnp.maximum(jnp.sum(onehot, axis=1, keepdims=True), 1.0)
    return jax.nn.log_softmax(g, axis=1)


if __name__ == "__main__":
    # small shapes: 2 graphs of 8 nodes each, in=4, hidden=32, out=8
    N, IN_C, HID, OUT_C, G = 16, 4, 32, 8, 2

    key = jax.random.PRNGKey(0)
    ks = jax.random.split(key, 4)

    x = jax.random.normal(ks[0], (N, IN_C), jnp.float32)

    # deterministic edges: an undirected ring within each graph
    src, dst = [], []
    npg = N // G
    for gi in range(G):
        off = gi * npg
        for i in range(npg):
            a = off + i
            b = off + (i + 1) % npg
            src += [a, b]
            dst += [b, a]
    edge_index = jnp.array([src, dst], dtype=jnp.int32)
    batch = jnp.array([i // npg for i in range(N)], dtype=jnp.int32)

    def glorot(k, shape):
        lim = (6.0 / (shape[0] + shape[1])) ** 0.5
        return jax.random.uniform(k, shape, jnp.float32, -lim, lim)

    # GCNConv weights [in, out]; biases init to zeros (PyG default)
    w1, b1 = glorot(ks[1], (IN_C, HID)), jnp.zeros((1, HID), jnp.float32)
    w2, b2 = glorot(ks[2], (HID, HID)), jnp.zeros((1, HID), jnp.float32)
    w3, b3 = glorot(ks[3], (HID, OUT_C)), jnp.zeros((1, OUT_C), jnp.float32)
    params = ((w1, b1), (w2, b2), (w3, b3))

    out = gcn_forward(x, edge_index, batch, params, G)
    jax.block_until_ready(out)
    assert out.shape == (G, OUT_C)

    ref = gcn_reference(x, edge_index, batch, params, G)
    max_diff = float(jnp.max(jnp.abs(out - ref)))
    assert max_diff < 1e-1, f"mismatch vs f32 reference: {max_diff}"
    print("KERNEL_OK")
</pallas_src>

<mosaic_0001>
module attributes {stable_mosaic.version = 11 : i64} {
  func.func @gcn_kernel(%arg0: i32, %arg1: i32, %arg2: memref<128x128xbf16, #tpu.memory_space<vmem>>, %arg3: memref<128x128xbf16, #tpu.memory_space<any>>, %arg4: memref<1x128x128xbf16, #tpu.memory_space<vmem>>, %arg5: memref<1x1x128xf32, #tpu.memory_space<vmem>>, %arg6: memref<8x128xbf16, #tpu.memory_space<vmem>>, %arg7: memref<8x128xf32, #tpu.memory_space<vmem>>, %arg8: memref<2x128x128xbf16, #tpu.memory_space<vmem>>, %arg9: memref<8x128xf32, #tpu.memory_space<vmem>>, %arg10: memref<!tpu.dma_semaphore, #tpu.memory_space<semaphore_mem>>) attributes {dimension_semantics = [#tpu.dimension_semantics<arbitrary>, #tpu.dimension_semantics<arbitrary>], iteration_bounds = array<i64: 3, 1>, scalar_prefetch = 0 : i64, scratch_operands = 3 : i64, tpu.core_type = #tpu.core_type<tc>, window_params = [{transform_indices = @transform_0, window_bounds = array<i64: 128, 128>}, {}, {transform_indices = @transform_2, window_bounds = array<i64: 1, 128, 128>}, {transform_indices = @transform_3, window_bounds = array<i64: 1, 1, 128>}, {transform_indices = @transform_4, window_bounds = array<i64: 8, 128>}, {pipeline_mode = #tpu.pipeline_mode<synchronous>, transform_indices = @transform_5, window_bounds = array<i64: 8, 128>}]} {
    %c0_i32 = arith.constant 0 : i32
    %0 = arith.cmpi eq, %arg0, %c0_i32 : i32
    %c0_i32_0 = arith.constant 0 : i32
    %1 = arith.cmpi eq, %arg1, %c0_i32_0 : i32
    %2 = arith.andi %0, %1 : i1
    %3 = arith.extui %2 : i1 to i32
    %c0_i32_1 = arith.constant 0 : i32
    %4 = arith.cmpi ne, %3, %c0_i32_1 : i32
    scf.if %4 {
      %c0_i32_20 = arith.constant 0 : i32
      %c0_i32_21 = arith.constant 0 : i32
      %c0_i32_22 = arith.constant 0 : i32
      %34 = tpu.memref_slice %arg8[%c0_i32_20, %c0_i32_21, %c0_i32_22] : memref<2x128x128xbf16, #tpu.memory_space<vmem>> -> memref<1x128x128xbf16, #tpu.memory_space<vmem>>
      %35 = tpu.memref_squeeze %34 : memref<1x128x128xbf16, #tpu.memory_space<vmem>> -> memref<128x128xbf16, #tpu.memory_space<vmem>>
      tpu.enqueue_dma source(%arg3 : memref<128x128xbf16, #tpu.memory_space<any>>) target(%35 : memref<128x128xbf16, #tpu.memory_space<vmem>>) target_semaphore(%arg10 : memref<!tpu.dma_semaphore, #tpu.memory_space<semaphore_mem>>)
      %c0_i32_23 = arith.constant 0 : i32
      %c0_i32_24 = arith.constant 0 : i32
      %c0_i32_25 = arith.constant 0 : i32
      %36 = tpu.memref_slice %arg8[%c0_i32_23, %c0_i32_24, %c0_i32_25] : memref<2x128x128xbf16, #tpu.memory_space<vmem>> -> memref<1x128x128xbf16, #tpu.memory_space<vmem>>
      %37 = tpu.memref_squeeze %36 : memref<1x128x128xbf16, #tpu.memory_space<vmem>> -> memref<128x128xbf16, #tpu.memory_space<vmem>>
      tpu.wait_dma2 semaphore(%arg10 : memref<!tpu.dma_semaphore, #tpu.memory_space<semaphore_mem>>) src(%arg3 : memref<128x128xbf16, #tpu.memory_space<any>>) dst(%37 : memref<128x128xbf16, #tpu.memory_space<vmem>>)
    } else {
    }
    %c2_i32 = arith.constant 2 : i32
    %5 = arith.cmpi eq, %arg0, %c2_i32 : i32
    %c0_i32_2 = arith.constant 0 : i32
    %6 = arith.cmpi eq, %arg1, %c0_i32_2 : i32
    %7 = arith.andi %5, %6 : i1
    %8 = arith.extui %7 : i1 to i32
    %c0_i32_3 = arith.constant 0 : i32
    %9 = arith.cmpi ne, %8, %c0_i32_3 : i32
    scf.if %9 {
      %cst_20 = arith.constant 0.000000e+00 : f32
      %34 = vector.broadcast %cst_20 : f32 to vector<8x128xf32>
      %c0_21 = arith.constant 0 : index
      %c0_22 = arith.constant 0 : index
      %35 = vector.load %arg9[%c0_21, %c0_22] : memref<8x128xf32, #tpu.memory_space<vmem>>, vector<8x128xf32>
      tpu.vector_store %arg9[%c0_21, %c0_22], %34 {strides = array<i32>} : memref<8x128xf32, #tpu.memory_space<vmem>>, vector<8x128xf32>,
    } else {
    }
    %c1_i32 = arith.constant 1 : i32
    %10 = arith.andi %arg0, %c1_i32 : i32
    %c1_i32_4 = arith.constant 1 : i32
    %11 = arith.addi %arg0, %c1_i32_4 : i32
    %c1_i32_5 = arith.constant 1 : i32
    %12 = arith.andi %11, %c1_i32_5 : i32
    %13 = arith.index_cast %10 : i32 to index
    %c0 = arith.constant 0 : index
    %c0_6 = arith.constant 0 : index
    %14 = vector.load %arg8[%13, %c0, %c0_6] : memref<2x128x128xbf16, #tpu.memory_space<vmem>>, vector<1x128x128xbf16>
    %15 = vector.shape_cast %14 : vector<1x128x128xbf16> to vector<128x128xbf16>
    %c0_7 = arith.constant 0 : index
    %c0_8 = arith.constant 0 : index
    %16 = vector.load %arg2[%c0_7, %c0_8] : memref<128x128xbf16, #tpu.memory_space<vmem>>, vector<128x128xbf16>
    %cst = arith.constant dense<0.000000e+00> : vector<128x128xf32>
    %17 = tpu.matmul %16, %15, %cst {dimension_numbers = #tpu.dot_dimension_numbers<[1], [0], [0], [1], [0, 0, 1, 1], [], []>} : vector<128x128xbf16>, vector<128x128xbf16>, vector<128x128xf32> -> vector<128x128xf32>
    %18 = arith.truncf %17 : vector<128x128xf32> to vector<128x128xbf16>
    %c0_9 = arith.constant 0 : index
    %c0_10 = arith.constant 0 : index
    %c0_11 = arith.constant 0 : index
    %19 = vector.load %arg4[%c0_9, %c0_10, %c0_11] : memref<1x128x128xbf16, #tpu.memory_space<vmem>>, vector<1x128x128xbf16>
    %20 = vector.shape_cast %19 : vector<1x128x128xbf16> to vector<128x128xbf16>
    %cst_12 = arith.constant dense<0.000000e+00> : vector<128x128xf32>
    %21 = tpu.matmul %18, %20, %cst_12 {dimension_numbers = #tpu.dot_dimension_numbers<[1], [0], [0], [1], [0, 0, 1, 1], [], []>} : vector<128x128xbf16>, vector<128x128xbf16>, vector<128x128xf32> -> vector<128x128xf32>
    %c0_13 = arith.constant 0 : index
    %c0_14 = arith.constant 0 : index
    %c0_15 = arith.constant 0 : index
    %22 = vector.load %arg5[%c0_13, %c0_14, %c0_15] : memref<1x1x128xf32, #tpu.memory_space<vmem>>, vector<1x1x128xf32>
    %23 = vector.shape_cast %22 : vector<1x1x128xf32> to vector<1x128xf32>
    %24 = vector.broadcast %23 : vector<1x128xf32> to vector<128x128xf32>
    %25 = arith.addf %21, %24 : vector<128x128xf32>
    %c128_i32 = arith.constant 128 : i32
    %26 = arith.muli %arg1, %c128_i32 : i32
    %27 = tpu.assume_multiple %26, 128 : i32
    %c2_i32_16 = arith.constant 2 : i32
    %28 = arith.cmpi slt, %arg0, %c2_i32_16 : i32
    %29 = arith.extui %28 : i1 to i32
    %c0_i32_17 = arith.constant 0 : i32
    %30 = arith.cmpi ne, %29, %c0_i32_17 : i32
    scf.if %30 {
      %cst_20 = arith.constant 0.000000e+00 : f32
      %34 = vector.broadcast %cst_20 : f32 to vector<128x128xf32>
      %35 = arith.maximumf %25, %34 : vector<128x128xf32>
      %36 = arith.truncf %35 : vector<128x128xf32> to vector<128x128xbf16>
      %37 = arith.index_cast %12 : i32 to index
      %38 = arith.index_cast %27 : i32 to index
      %c0_21 = arith.constant 0 : index
      %39 = vector.load %arg8[%37, %38, %c0_21] : memref<2x128x128xbf16, #tpu.memory_space<vmem>>, vector<1x128x128xbf16>
      %40 = vector.shape_cast %39 : vector<1x128x128xbf16> to vector<128x128xbf16>
      %41 = vector.shape_cast %36 : vector<128x128xbf16> to vector<1x128x128xbf16>
      tpu.vector_store %arg8[%37, %38, %c0_21], %41 {strides = array<i32>} : memref<2x128x128xbf16, #tpu.memory_space<vmem>>, vector<1x128x128xbf16>,
    } else {
    }
    %c2_i32_18 = arith.constant 2 : i32
    %31 = arith.cmpi eq, %arg0, %c2_i32_18 : i32
    %32 = arith.extui %31 : i1 to i32
    %c0_i32_19 = arith.constant 0 : i32
    %33 = arith.cmpi ne, %32, %c0_i32_19 : i32
    scf.if %33 {
      %c0_20 = arith.constant 0 : index
      %c0_21 = arith.constant 0 : index
      %34 = vector.load %arg9[%c0_20, %c0_21] : memref<8x128xf32, #tpu.memory_space<vmem>>, vector<8x128xf32>
      %c0_22 = arith.constant 0 : index
      %c0_23 = arith.constant 0 : index
      %35 = vector.load %arg6[%c0_22, %c0_23] : memref<8x128xbf16, #tpu.memory_space<vmem>>, vector<8x128xbf16>
      %36 = arith.truncf %25 : vector<128x128xf32> to vector<128x128xbf16>
      %cst_24 = arith.constant dense<0.000000e+00> : vector<8x128xf32>
      %37 = tpu.matmul %35, %36, %cst_24 {dimension_numbers = #tpu.dot_dimension_numbers<[1], [0], [0], [1], [0, 0, 1, 1], [], []>} : vector<8x128xbf16>, vector<128x128xbf16>, vector<8x128xf32> -> vector<8x128xf32>
      %38 = arith.addf %34, %37 : vector<8x128xf32>
      %c0_25 = arith.constant 0 : index
      %c0_26 = arith.constant 0 : index
      %39 = vector.load %arg9[%c0_25, %c0_26] : memref<8x128xf32, #tpu.memory_space<vmem>>, vector<8x128xf32>
      tpu.vector_store %arg9[%c0_25, %c0_26], %38 {strides = array<i32>} : memref<8x128xf32, #tpu.memory_space<vmem>>, vector<8x128xf32>,
      %c0_i32_27 = arith.constant 0 : i32
      %40 = arith.cmpi eq, %arg1, %c0_i32_27 : i32
      %41 = arith.extui %40 : i1 to i32
      %c0_i32_28 = arith.constant 0 : i32
      %42 = arith.cmpi ne, %41, %c0_i32_28 : i32
      scf.if %42 {
        %c0_29 = arith.constant 0 : index
        %c0_30 = arith.constant 0 : index
        %43 = vector.load %arg9[%c0_29, %c0_30] : memref<8x128xf32, #tpu.memory_space<vmem>>, vector<8x128xf32>
        %44 = tpu.iota {dimensions = array<i32: 1>} : vector<8x128xi32>
        %c8_i32 = arith.constant 8 : i32
        %45 = vector.broadcast %c8_i32 : i32 to vector<8x128xi32>
        %46 = arith.cmpi slt, %44, %45 : vector<8x128xi32>
        %cst_31 = arith.constant -1.000000e+30 : f32
        %47 = vector.broadcast %cst_31 : f32 to vector<8x128xf32>
        %48 = arith.select %46, %43, %47 : vector<8x128xi1>, vector<8x128xf32>
        %cst_32 = arith.constant dense<0xFF800000> : vector<8xf32>
        %49 = vector.multi_reduction <maximumf>, %48, %cst_32 [1] : vector<8x128xf32> to vector<8xf32>
        %50 = vector.shape_cast %49 : vector<8xf32> to vector<8x1xf32>
        %51 = vector.broadcast %50 : vector<8x1xf32> to vector<8x128xf32>
        %52 = arith.subf %48, %51 : vector<8x128xf32>
        %53 = math.exp %52 : vector<8x128xf32>
        %cst_33 = arith.constant dense<0.000000e+00> : vector<8xf32>
        %54 = vector.multi_reduction <add>, %53, %cst_33 [1] : vector<8x128xf32> to vector<8xf32>
        %55 = vector.shape_cast %54 : vector<8xf32> to vector<8x1xf32>
        %56 = math.log %55 : vector<8x1xf32>
        %57 = vector.broadcast %56 : vector<8x1xf32> to vector<8x128xf32>
        %58 = arith.subf %52, %57 : vector<8x128xf32>
        %c0_34 = arith.constant 0 : index
        %c0_35 = arith.constant 0 : index
        %59 = vector.load %arg7[%c0_34, %c0_35] : memref<8x128xf32, #tpu.memory_space<vmem>>, vector<8x128xf32>
        tpu.vector_store %arg7[%c0_34, %c0_35], %58 {strides = array<i32>} : memref<8x128xf32, #tpu.memory_space<vmem>>, vector<8x128xf32>,
      } else {
      }
    } else {
    }
    return
  }
  func.func @transform_0(%arg0: i32, %arg1: i32) -> (i32, i32) {
    %c0_i32 = arith.constant 0 : i32
    %c0_i32_0 = arith.constant 0 : i32
    return %arg1, %c0_i32 : i32, i32
  }
  func.func @transform_2(%arg0: i32, %arg1: i32) -> (i32, i32, i32) {
    %c0_i32 = arith.constant 0 : i32
    %c0_i32_0 = arith.constant 0 : i32
    %c0_i32_1 = arith.constant 0 : i32
    return %arg0, %c0_i32, %c0_i32_0 : i32, i32, i32
  }
  func.func @transform_3(%arg0: i32, %arg1: i32) -> (i32, i32, i32) {
    %c0_i32 = arith.constant 0 : i32
    %c0_i32_0 = arith.constant 0 : i32
    %c0_i32_1 = arith.constant 0 : i32
    return %arg0, %c0_i32, %c0_i32_0 : i32, i32, i32
  }
  func.func @transform_4(%arg0: i32, %arg1: i32) -> (i32, i32) {
    %c0_i32 = arith.constant 0 : i32
    %c0_i32_0 = arith.constant 0 : i32
    return %c0_i32, %arg1 : i32, i32
  }
  func.func @transform_5(%arg0: i32, %arg1: i32) -> (i32, i32) {
    %c0_i32 = arith.constant 0 : i32
    %c0_i32_0 = arith.constant 0 : i32
    %c0_i32_1 = arith.constant 0 : i32
    return %c0_i32, %c0_i32_0 : i32, i32
  }
}

</mosaic_0001>

<bundles_post_ra>
// kernel: tpu_custom_call.1
= control target key start
LH: loop header
LB: loop body
LE: loop exit
PB: predicated region body
PF: predicated region fallthrough
CT: control target
= control target key end

     0   :  { %10 = vsyncpa [#allocation6], 0  ;;  %s1813_s0 = inlined_call_operand.hbm [shape: bf16[128,128], index: 0, kind: input, shape index: {}]   ;;  %s1814_s1 = inlined_call_operand.hbm [shape: bf16[128,128], index: 1, kind: input, shape index: {}]   ;;  %s1815_s2 = inlined_call_operand.hbm [shape: bf16[3,128,128], index: 2, kind: input, shape index: {}]   ;;  %s1816_s3 = inlined_call_operand.vmem [shape: f32[3,1,128], index: 3, kind: input, shape index: {}]   ;;  %s1817_s4 = inlined_call_operand.vmem [shape: bf16[8,128], index: 4, kind: input, shape index: {}]   ;;  %s1818_s5 = inlined_call_operand.hbm [shape: f32[8,128], index: 5, kind: output, shape index: {}]  }
   0x1   :  { %11 = vsyncpa [#allocation9], 0 }
   0x2   :  { %13 = vsyncpa [#allocation9 + $0x1], 0 }
   0x3   :  { %14 = vsyncpa [#allocation7], 0  ;;  %s1576_s18 = smov 0   ;;  %s1578_s19 = smov 0  }
   0x4   :  { %s1580_s20 = smov 0   ;;  %s1582_s21 = smov 0  }
   0x5   :  { %s1584_s22 = smov 0   ;;  %s1586_s23 = smov 0  }
   0x6 LB: > { %s1819_s24 = sadd.s32 4294967295, %s1535_s23   ;;  %p78_p0 = scmp.ne.s32.totalorder %s1519_s19, %s1515_s18  ;;  %s1535_s23 = sphi %s1586_s23, %s20_s23   ;;  %s1531_s22 = sphi %s1584_s22, %s1831_s22   ;;  %s1527_s21 = sphi %s1582_s21, %s1830_s21   ;;  %s1523_s20 = sphi %s1580_s20, %s1829_s20   ;;  %s1519_s19 = sphi %s1578_s19, %s1828_s19   ;;  %s1515_s18 = sphi %s1576_s18, %s1827_s18  }
   0x7   : > { %p1608_p1 = scmp.eq.s32.totalorder %s1819_s24, 0  ;;  %p1005_p2 = scmp.ge.s32.totalorder %s1535_s23, 1 }
   0x8   : > { %p162_p3 = scmp.lt.s32.totalorder %s1535_s23, 4  ;;  %s1537_s28 = smov [#allocation5]  }
   0x9   : > { %p1616_p4 = por %p1608_p1, %p78_p0  ;;  %s177_s29 = sshll.u32 %s1537_s28, 4  ;;  %s178_s29 = int_to_ptr.vmem [resolvable:$true] %s177_s29 }
   0xa   : > { %p1620_p5 = pnand %p1005_p2, %p162_p3  ;;  %s32_s6 = sadd.s32 1, %s1531_s22 }
   0xb   : > { %s1382_s7 = scalar_lea.vmem %s178_s29, 1024  ;;  %p1390_p12 = scmp.lt.s32.totalorder %s178_s29, %s178_s29 }
   0xc   : > { %p1274_p6 = pneg %p1620_p5  ;;  %p1383_p9 = scmp.ne.s32.totalorder %s178_s29, %s1382_s7 }
   0xd   : > { %p1391_p13 = scmp.lt.s32.totalorder %s1382_s7, %s1382_s7 }
   0xe   : > { %p1628_p7 = pnand %p1274_p6, %p1608_p1 }
   0xf   : > { %p1392_p0 = por %p1391_p13, %p1390_p12 }
  0x10   : > { %p1373_p8 = pneg %p1628_p7 }
  0x12   : > { %p1385_p10 = pnand %p1383_p9, %p1373_p8 }
  0x14   : > { %p1386_p11 = pneg %p1385_p10 }
  0x16   : > { %p1393_p2 = pnand %p1392_p0, %p1386_p11 }
  0x18   : > { %1396 = shalt.err (!%p1393_p2)
}
  0x19   : > { %s1538_s8 = smov 64   ;;  %s1539_s9 = smov 4  }
  0x1a   : > { %1277 = dma.hbm_to_vmem [thread:$0]  (!%p1628_p7), %s1813_s0, 1024, %s178_s29, [#allocation6], %s1538_s8, %s1538_s8, %s1539_s9  }
  0x1b   : > { %p34_p3 = scmp.ge.s32.totalorder %s32_s6, 3  ;;  %s65_s12 = sadd.s32 1, %s1523_s20 }
  0x1c   : > { %p72_p6 = scmp.ne.s32.totalorder %s1523_s20, %s1519_s19  ;;  %p73_p8 = scmp.eq.s32.totalorder %s1535_s23, 0 }
  0x1d   : > { %s1833_s6 = smov (%p34_p3, %s32_s6), 0  ;;  %p1283_p10 = scmp.lt.s32.totalorder %s1535_s23, 3 }
  0x1e   : > { %p74_p9 = por %p73_p8, %p72_p6  ;;  %s62_s13 = ssub.s32 %s1531_s22, %s1833_s6 }
  0x1f   : > { %s198_s14 = sand.u32 1, %s1523_s20   ;;  %p63_p11 = scmp.eq.s32.totalorder %s62_s13, 0 }
  0x20   : > { %s1009_s15 = sshll.u32 %s198_s14, 6  ;;  %s1069_s16 = sshll.u32 %s1531_s22, 10 }
  0x21   : > { %s1655_s17 = scalar_select %p63_p11, %s1523_s20, %s65_s12  }
  0x22   : > { %s208_s29 = scalar_lea.hbm %s1815_s2, %s1069_s16  ;;  %s202_s30 = scalar_lea.vmem [#allocation8], %s1009_s15 }
  0x23   : > { %s209_s7 = sshll.u32 %s202_s30, 4  ;;  %p1660_p7 = pnand %p1283_p10, %p74_p9  ;;  %s210_s7 = int_to_ptr.vmem [resolvable:$true] %s209_s7 }
  0x24   : > { %s199_s11 = scalar_lea.sflag [#allocation9], %s198_s14  ;;  %s1410_s13 = scalar_lea.vmem %s210_s7, 1024 }
  0x25   : > { %p1399_p12 = pneg %p1660_p7  ;;  %p1411_p13 = scmp.ne.s32.totalorder %s210_s7, %s1410_s13 }
  0x26   : > { %s1540_s12 = smov [#allocation8]  }
  0x27   : > { %p1413_p0 = pnand %p1411_p13, %p1399_p12  ;;  %s1415_s24 = sshll.u32 %s1540_s12, 4  ;;  %s1416_s24 = int_to_ptr.vmem [resolvable:$false] %s1415_s24 }
  0x28   : > { %s1417_s18 = scalar_lea.vmem %s1416_s24, 2048  ;;  %p1418_p3 = scmp.lt.s32.totalorder %s210_s7, %s1416_s24 }
  0x29   : > { %p1414_p2 = pneg %p1413_p0  ;;  %p1419_p6 = scmp.lt.s32.totalorder %s1417_s18, %s1410_s13 }
  0x2b   : > { %p1420_p8 = por %p1419_p6, %p1418_p3 }
  0x2d   : > { %p1421_p9 = pnand %p1420_p8, %p1414_p2 }
  0x2f   : > { %1424 = shalt.err (!%p1421_p9)
}
  0x30   : > { %1281 = dma.hbm_to_vmem [thread:$0]  (!%p1660_p7), %s208_s29, 1024, %s210_s7, %s199_s11, %s1538_s8, %s1538_s8, %s1539_s9  }
  0x31   : > { %227 = sbr.rel (%p1620_p5) target bundleno = 1118 (0x45e), region = 36 }
  0x36   : > { %1498 = dma.done.wait (%p1608_p1), [#allocation6], 1024  }
  0x37   : > { %1500 = vsyncadd (%p1608_p1), [#allocation6], 4294966272  ;;  %s233_s24 = sand.u32 1, %s1519_s19  }
  0x38   : > { %s1014_s14 = sshll.u32 %s233_s24, 6  ;;  %s234_s15 = scalar_lea.sflag [#allocation9], %s233_s24 }
  0x39   : > { %s1678_s16 = scalar_lea.vmem [#allocation8], %s1014_s14 }
  0x3a   : > { %1502 = dma.done.wait (%p1616_p4), %s234_s15, 1024  }
  0x3b   : > { %1504 = vsyncadd (%p1616_p4), %s234_s15, 4294966272  ;;  %p265_p5 = scmp.lt.s32.totalorder %s1527_s21, 2  ;;  %p273_p10 = scmp.eq.s32.totalorder %s1527_s21, 0 }
  0x3c   : > { %s1541_s27 = smov [#allocation2]  }
  0x3d   : > { %s1687_s25 = scalar_select %p265_p5, %s1527_s21, 2 }
  0x3e   : > { %s286_s8 = sshll.u32 %s1541_s27, 4  ;;  %s287_s8 = int_to_ptr.vmem [resolvable:$true] %s286_s8 }
  0x3f   : > { %s267_s29 = scalar_lea.vmem %s1816_s3, %s1687_s25  ;;  %s1435_s30 = scalar_lea.vmem %s287_s8, 1024 }
  0x40   : > { %p1436_p1 = scmp.ne.s32.totalorder %s287_s8, %s1435_s30  ;;  %s1441_s26 = scalar_lea.vmem %s287_s8, 2048 }
  0x41   : > { %p1442_p7 = scmp.lt.s32.totalorder %s287_s8, %s287_s8  ;;  %p1443_p12 = scmp.lt.s32.totalorder %s1441_s26, %s1435_s30 }
  0x42   : > { %p1437_p4 = pnand %p1436_p1, %p273_p10 }
  0x43   : > { %p1444_p13 = por %p1443_p12, %p1442_p7 }
  0x44   : > { %p1438_p11 = pneg %p1437_p4 }
  0x46   : > { %p1445_p0 = pnand %p1444_p13, %p1438_p11 }
  0x48   : > { %1448 = shalt.err (!%p1445_p0)  }
  0x49   : > { %1268 = dma.hbm_to_vmem [thread:$0]  (%p273_p10), %s1814_s1, 1024, %s287_s8, [#allocation4] }
  0x4a   : > { %1506 = dma.done.wait (%p273_p10), [#allocation4], 1024 }
  0x4b   : > { %1508 = vsyncadd (%p273_p10), [#allocation4], 4294966272  ;;  %p294_p2 = scmp.eq.s32.totalorder %s1527_s21, 2 }
  0x4c   : > { %v1542_v0 = vmov (%p294_p2), 0.0  }
  0x4d   : > { %298 = sbr.rel (!%p294_p2) target bundleno = 82 (0x52), region = 56  ;;  %299 = vst [vmem:[#allocation3] sm:$0xff] (%p294_p2), %v1542_v0 }
  0x52 PF: > { %s300_s11 = sand.u32 1, %s1527_s21  ;;  %s301_s13 = sadd.s32 1, %s1527_s21  ;;  %v1351_v1 = vld [vmem:[#allocation5] sm:$0xff]   ;;  %v1359_v7 = vld [vmem:[%s1678_s16 + $0x38] sm:$0xff]   ;;  %v1360_v8 = vld [vmem:[%s1678_s16 + $0x30] sm:$0xff]  }
  0x53   : > { %s1707_s12 = sand.u32 1, %s301_s13  ;;  %s1072_s18 = sshll.u32 %s300_s11, 6  ;;  %1194 = vmatprep.mubr.bf16.mxu0 %v1351_v1  ;;  %1210 = vmatprep.subr.bf16.mxu1 %v1359_v7  ;;  %v1361_v10 = vld [vmem:[%s1678_s16 + $0x28] sm:$0xff]   ;;  %v1362_v12 = vld [vmem:[%s1678_s16 + $0x20] sm:$0xff]   ;;  %v1363_v14 = vld [vmem:[%s1678_s16 + $0x18] sm:$0xff]  }
  0x54   : > { %s1709_s24 = scalar_lea.vmem [#allocation2], %s1072_s18  ;;  %1211 = vmatpush3.bf16.msra.mxu1 %v1359_v7  ;;  %v1352_v15 = vld [vmem:[#allocation5 + $0x8] sm:$0xff]   ;;  %v1364_v16 = vld [vmem:[%s1678_s16 + $0x10] sm:$0xff]   ;;  %v1354_v18 = vld [vmem:[#allocation5 + $0x18] sm:$0xff]   ;;  %p1044_p3 = scmp.ge.s32.totalorder %s1527_s21, 2 }
  0x55   : > { %v1343_v2 = vld [vmem:[%s1709_s24 + $0x38] sm:$0xff]   ;;  %v1344_v3 = vld [vmem:[%s1709_s24 + $0x30] sm:$0xff]   ;;  %v1345_v4 = vld [vmem:[%s1709_s24 + $0x28] sm:$0xff]   ;;  %1212 = vmatprep.subr.bf16.mxu1 %v1360_v8 }
  0x56   : > { %1178 = vmatprep.subr.bf16.mxu0 %v1343_v2  ;;  %v1346_v5 = vld [vmem:[%s1709_s24 + $0x20] sm:$0xff]   ;;  %v1347_v6 = vld [vmem:[%s1709_s24 + $0x18] sm:$0xff]   ;;  %v1348_v9 = vld [vmem:[%s1709_s24 + $0x10] sm:$0xff]  }
  0x57   : > { %1179 = vmatpush3.bf16.msra.mxu0 %v1343_v2  ;;  %v1349_v11 = vld [vmem:[%s1709_s24 + $0x8] sm:$0xff]   ;;  %v1350_v13 = vld [vmem:[%s1709_s24] sm:$0xff]   ;;  %v1353_v17 = vld [vmem:[#allocation5 + $0x10] sm:$0xff]  }
  0x58   : > { %1180 = vmatprep.subr.bf16.mxu0 %v1344_v3  ;;  %1213 = vmatpush3.bf16.msra.mxu1 %v1360_v8  ;;  %v1355_v19 = vld [vmem:[#allocation5 + $0x20] sm:$0xff]   ;;  %v1356_v20 = vld [vmem:[#allocation5 + $0x28] sm:$0xff]   ;;  %v1357_v21 = vld [vmem:[#allocation5 + $0x30] sm:$0xff]  }
  0x59   : > { %1214 = vmatprep.subr.bf16.mxu1 %v1361_v10  ;;  %v1358_v22 = vld [vmem:[#allocation5 + $0x38] sm:$0xff]   ;;  %v1365_v23 = vld [vmem:[%s1678_s16 + $0x8] sm:$0xff]   ;;  %v1366_v24 = vld [vmem:[%s1678_s16] sm:$0xff]   ;;  %s1089_s16 = sshll.u32 (!%p1044_p3), %s1707_s12, 6 }
  0x5a   : > { %v1035_v49 = vld [vmem:[%s267_s29] ss:$0 sm:$0xff]  ;;  %s797_s25 = scalar_lea.vmem (!%p1044_p3), [#allocation2], %s1089_s16 }
  0x5b   : > { %1181 = vmatpush3.bf16.msra.mxu0 %v1344_v3 }
  0x5c   : > { %1182 = vmatprep.subr.bf16.mxu0 %v1345_v4  ;;  %1215 = vmatpush3.bf16.msra.mxu1 %v1361_v10 }
  0x5d   : > { %1216 = vmatprep.subr.bf16.mxu1 %v1362_v12 }
  0x5f   : > { %1183 = vmatpush3.bf16.msra.mxu0 %v1345_v4 }
  0x60   : > { %1184 = vmatprep.subr.bf16.mxu0 %v1346_v5  ;;  %1217 = vmatpush3.bf16.msra.mxu1 %v1362_v12 }
  0x61   : > { %1218 = vmatprep.subr.bf16.mxu1 %v1363_v14 }
  0x63   : > { %1185 = vmatpush3.bf16.msra.mxu0 %v1346_v5 }
  0x64   : > { %1186 = vmatprep.subr.bf16.mxu0 %v1347_v6  ;;  %1219 = vmatpush3.bf16.msra.mxu1 %v1363_v14 }
  0x65   : > { %1220 = vmatprep.subr.bf16.mxu1 %v1364_v16 }
  0x67   : > { %1187 = vmatpush3.bf16.msra.mxu0 %v1347_v6 }
  0x68   : > { %1188 = vmatprep.subr.bf16.mxu0 %v1348_v9  ;;  %1221 = vmatpush3.bf16.msra.mxu1 %v1364_v16 }
  0x69   : > { %1222 = vmatprep.subr.bf16.mxu1 %v1365_v23 }
  0x6b   : > { %1189 = vmatpush3.bf16.msra.mxu0 %v1348_v9 }
  0x6c   : > { %1190 = vmatprep.subr.bf16.mxu0 %v1349_v11  ;;  %1223 = vmatpush3.bf16.msra.mxu1 %v1365_v23 }
  0x6d   : > { %1224 = vmatprep.subr.bf16.mxu1 %v1366_v24 }
  0x6f   : > { %1191 = vmatpush3.bf16.msra.mxu0 %v1349_v11 }
  0x70   : > { %1192 = vmatprep.subr.bf16.mxu0 %v1350_v13  ;;  %1225 = vmatpush3.bf16.msra.mxu1 %v1366_v24 }
  0x73   : > { %1193 = vmatpush3.bf16.msra.mxu0 %v1350_v13 }
  0x76   : > { %1195 = vmatmul.mubr.bf16.vlgmr.msra.gmra.mxu0 %v1352_v15 }
  0x77   : > { %1198 = vmatprep.mubr.bf16.mxu0 %v1353_v17 }
  0x7e   : > { %1199 = vmatmul.mubr.bf16.gmra.mxu0 %v1354_v18 }
  0x7f   : > { %1202 = vmatprep.mubr.bf16.mxu0 %v1355_v19 }
  0x86   : > { %1203 = vmatmul.mubr.bf16.gmra.mxu0 %v1356_v20 }
  0x87   : > { %1206 = vmatprep.mubr.bf16.mxu0 %v1357_v21 }
  0x8e   : > { %1207 = vmatmul.mubr.bf16.gmra.mxu0 %v1358_v22 }
 0x136   : > { %v1196_v25 = vpop.f32.mrf.mxu0 }
 0x138   : > { %v468_v26 = vpop.f32.mrf.mxu0 }
 0x13a   : > { %v1197_v27 = vpop.f32.mrf.mxu0 }
 0x13b   : > { %v532_v30 = vpack.c.bf16 %v1197_v27, %v1196_v25 }
 0x13c   : > { %v471_v28 = vpop.f32.mrf.mxu0 }
 0x13d   : > { %v531_v29 = vpack.c.bf16 %v471_v28, %v468_v26 }
 0x13e   : > { %v1200_v31 = vpop.f32.mrf.mxu0 }
 0x13f   : > { %1226 = vmatprep.mubr.bf16.mxu1 %v531_v29 }
 0x140   : > { %v484_v32 = vpop.f32.mrf.mxu0  ;;  %1227 = vmatmul.mubr.bf16.vlgmr.msra.gmra.mxu1 %v532_v30 }
 0x142   : > { %v1201_v33 = vpop.f32.mrf.mxu0 }
 0x143   : > { %v534_v36 = vpack.c.bf16 %v1201_v33, %v1200_v31 }
 0x144   : > { %v487_v34 = vpop.f32.mrf.mxu0 }
 0x145   : > { %v533_v35 = vpack.c.bf16 %v487_v34, %v484_v32 }
 0x146   : > { %v1204_v37 = vpop.f32.mrf.mxu0 }
 0x147   : > { %1230 = vmatprep.mubr.bf16.mxu1 %v533_v35 }
 0x148   : > { %v500_v38 = vpop.f32.mrf.mxu0  ;;  %1231 = vmatmul.mubr.bf16.gmra.mxu1 %v534_v36 }
 0x14a   : > { %v1205_v39 = vpop.f32.mrf.mxu0 }
 0x14b   : > { %v536_v42 = vpack.c.bf16 %v1205_v39, %v1204_v37 }
 0x14c   : > { %v503_v40 = vpop.f32.mrf.mxu0 }
 0x14d   : > { %v535_v41 = vpack.c.bf16 %v503_v40, %v500_v38 }
 0x14e   : > { %v1208_v43 = vpop.f32.mrf.mxu0 }
 0x14f   : > { %1234 = vmatprep.mubr.bf16.mxu1 %v535_v41 }
 0x150   : > { %v516_v44 = vpop.f32.mrf.mxu0  ;;  %1235 = vmatmul.mubr.bf16.gmra.mxu1 %v536_v42 }
 0x152   : > { %v1209_v45 = vpop.f32.mrf.mxu0 }
 0x153   : > { %v538_v48 = vpack.c.bf16 %v1209_v45, %v1208_v43 }
 0x154   : > { %v519_v46 = vpop.f32.mrf.mxu0 }
 0x155   : > { %v537_v47 = vpack.c.bf16 %v519_v46, %v516_v44 }
 0x157   : > { %1238 = vmatprep.mubr.bf16.mxu1 %v537_v47 }
 0x158   : > { %1239 = vmatmul.mubr.bf16.gmra.mxu1 %v538_v48 }
 0x200   : > { %v1228_v50 = vpop.f32.mrf.mxu1 }
 0x201   : > { %v1732_v51 = vadd.f32 %v1228_v50, %v1035_v49 }
 0x202   : > { %v644_v52 = vpop.f32.mrf.mxu1 }
 0x203   : > { %v1734_v53 = vadd.f32 %v1035_v49, %v644_v52 }
 0x204   : > { %v1229_v54 = vpop.f32.mrf.mxu1 }
 0x205   : > { %v1736_v55 = vadd.f32 %v1229_v54, %v1035_v49 }
 0x206   : > { %v647_v56 = vpop.f32.mrf.mxu1 }
 0x207   : > { %v1738_v57 = vadd.f32 %v1035_v49, %v647_v56 }
 0x208   : > { %v1232_v58 = vpop.f32.mrf.mxu1 }
 0x209   : > { %v1740_v59 = vadd.f32 %v1232_v58, %v1035_v49 }
 0x20a   : > { %v660_v60 = vpop.f32.mrf.mxu1 }
 0x20b   : > { %v1742_v61 = vadd.f32 %v1035_v49, %v660_v60 }
 0x20c   : > { %v1233_v62 = vpop.f32.mrf.mxu1 }
 0x20d   : > { %v1744_v63 = vadd.f32 %v1233_v62, %v1035_v49 }
 0x20e   : > { %v663_v0 = vpop.f32.mrf.mxu1 }
 0x20f   : > { %v1746_v1 = vadd.f32 %v1035_v49, %v663_v0 }
 0x210   : > { %v1236_v2 = vpop.f32.mrf.mxu1 }
 0x211   : > { %v1748_v3 = vadd.f32 %v1236_v2, %v1035_v49 }
 0x212   : > { %v676_v4 = vpop.f32.mrf.mxu1 }
 0x213   : > { %v1750_v5 = vadd.f32 %v1035_v49, %v676_v4 }
 0x214   : > { %v1237_v6 = vpop.f32.mrf.mxu1 }
 0x215   : > { %v688_v7 = vadd.f32 %v1237_v6, %v1035_v49 }
 0x216   : > { %v679_v8 = vpop.f32.mrf.mxu1 }
 0x217   : > { %v680_v9 = vadd.f32 %v1035_v49, %v679_v8 }
 0x218   : > { %v1240_v10 = vpop.f32.mrf.mxu1 }
 0x219   : > { %v701_v11 = vadd.f32 %v1240_v10, %v1035_v49 }
 0x21a   : > { %v692_v12 = vpop.f32.mrf.mxu1 }
 0x21b   : > { %v693_v13 = vadd.f32 %v1035_v49, %v692_v12  ;;  %711 = sbr.rel (%p1044_p3) target bundleno = 554 (0x22a), region = 60 }
 0x21c   : > { %v1241_v14 = vpop.f32.mrf.mxu1 }
 0x21d   : > { %v704_v15 = vadd.f32 %v1241_v14, %v1035_v49 }
 0x21e   : > { %v695_v16 = vpop.f32.mrf.mxu1 }
 0x21f   : > { %v696_v17 = vadd.f32 %v1035_v49, %v695_v16 }
 0x220   : > { %v712_v18 = vmax.f32 %v1734_v53, 0.0  ;;  %v713_v19 = vmax.f32 %v1738_v57, 0.0  ;;  %v714_v20 = vmax.f32 %v1732_v51, 0.0  ;;  %v715_v21 = vmax.f32 %v1736_v55, 0.0 }
 0x221   : > { %v716_v22 = vmax.f32 %v1742_v61, 0.0  ;;  %v717_v23 = vmax.f32 %v1746_v1, 0.0  ;;  %v718_v24 = vmax.f32 %v1740_v59, 0.0  ;;  %v719_v25 = vmax.f32 %v1744_v63, 0.0 }
 0x222   : > { %v1093_v26 = vpack.c.bf16 %v713_v19, %v712_v18  ;;  %v1098_v27 = vpack.c.bf16 %v715_v21, %v714_v20  ;;  %v720_v28 = vmax.f32 %v1750_v5, 0.0  ;;  %v721_v29 = vmax.f32 %v680_v9, 0.0 }
 0x223   : > { %v1103_v30 = vpack.c.bf16 %v717_v23, %v716_v22  ;;  %v1108_v31 = vpack.c.bf16 %v719_v25, %v718_v24  ;;  %v722_v32 = vmax.f32 %v1748_v3, 0.0  ;;  %v723_v33 = vmax.f32 %v688_v7, 0.0 }
 0x224   : > { %1094 = vst [vmem:[%s797_s25] sm:$0xff] %v1093_v26   ;;  %1130 = vst [vmem:[%s797_s25 + $0x8] sm:$0xff] %v1098_v27   ;;  %v1113_v34 = vpack.c.bf16 %v721_v29, %v720_v28  ;;  %v724_v35 = vmax.f32 %v693_v13, 0.0  ;;  %v725_v36 = vmax.f32 %v696_v17, 0.0  ;;  %v726_v37 = vmax.f32 %v701_v11, 0.0 }
 0x225   : > { %1131 = vst [vmem:[%s797_s25 + $0x10] sm:$0xff] %v1103_v30   ;;  %1132 = vst [vmem:[%s797_s25 + $0x18] sm:$0xff] %v1108_v31   ;;  %v1118_v38 = vpack.c.bf16 %v723_v33, %v722_v32  ;;  %v727_v39 = vmax.f32 %v704_v15, 0.0 }
 0x226   : > { %1133 = vst [vmem:[%s797_s25 + $0x20] sm:$0xff] %v1113_v34   ;;  %v1123_v40 = vpack.c.bf16 %v725_v36, %v724_v35 }
 0x227   : > { %1134 = vst [vmem:[%s797_s25 + $0x28] sm:$0xff] %v1118_v38   ;;  %v1128_v41 = vpack.c.bf16 %v727_v39, %v726_v37 }
 0x228   : > { %1135 = vst [vmem:[%s797_s25 + $0x30] sm:$0xff] %v1123_v40  }
 0x229   : > { %1136 = vst [vmem:[%s797_s25 + $0x38] sm:$0xff] %v1128_v41  }
 0x22a PF: > { %p1063_p6 = scmp.ne.s32.totalorder %s1527_s21, 2 }
 0x22c   : > { %816 = sbr.rel (%p1063_p6) target bundleno = 1103 (0x44f), region = 64 }
 0x231   : > { %v826_v42 = vpack.c.bf16 %v704_v15, %v701_v11  ;;  %v1543_v43 = vmov 0.0   ;;  %v825_v44 = vpack.c.bf16 %v696_v17, %v693_v13  ;;  %vm1544_vm0 = vmmov 0   ;;  %v818_v52 = vld [vmem:[%s1817_s4] sm:$0xf] }
 0x232   : > { %1242 = vmatprep.subr.bf16.mxu0 %v1543_v43  ;;  %1258 = vmatprep.mubr.msk.bf16.mxu0 %vm1544_vm0, %v1543_v43  ;;  %v824_v45 = vpack.c.bf16 %v688_v7, %v1748_v3  ;;  %v823_v46 = vpack.c.bf16 %v680_v9, %v1750_v5  ;;  %v822_v47 = vpack.c.bf16 %v1744_v63, %v1740_v59  ;;  %v873_v54 = vlaneseq  ;;  %v817_v58 = vld [vmem:[#allocation3] sm:$0xff] }
 0x233   : > { %1243 = vmatpush3.bf16.msra.mxu0 %v826_v42  ;;  %v821_v48 = vpack.c.bf16 %v1746_v1, %v1742_v61  ;;  %v820_v49 = vpack.c.bf16 %v1736_v55, %v1732_v51  ;;  %v819_v50 = vpack.c.bf16 %v1738_v57, %v1734_v53 }
 0x234   : > { %1244 = vmatprep.subr.bf16.mxu0 %v1543_v43  ;;  %v874_v56 = vand.u32 127, %v873_v54 }
 0x236   : > { %vm875_vm1 = vcmp.lt.s32.totalorder %v874_v56, 8 }
 0x237   : > { %1245 = vmatpush3.bf16.msra.mxu0 %v825_v44 }
 0x238   : > { %1246 = vmatprep.subr.bf16.mxu0 %v1543_v43 }
 0x23b   : > { %1247 = vmatpush3.bf16.msra.mxu0 %v824_v45 }
 0x23c   : > { %1248 = vmatprep.subr.bf16.mxu0 %v1543_v43 }
 0x23f   : > { %1249 = vmatpush3.bf16.msra.mxu0 %v823_v46 }
 0x240   : > { %1250 = vmatprep.subr.bf16.mxu0 %v1543_v43 }
 0x243   : > { %1251 = vmatpush3.bf16.msra.mxu0 %v822_v47 }
 0x244   : > { %1252 = vmatprep.subr.bf16.mxu0 %v1543_v43 }
 0x247   : > { %1253 = vmatpush3.bf16.msra.mxu0 %v821_v48 }
 0x248   : > { %1254 = vmatprep.subr.bf16.mxu0 %v1543_v43 }
 0x24b   : > { %1255 = vmatpush3.bf16.msra.mxu0 %v820_v49 }
 0x24c   : > { %1256 = vmatprep.subr.bf16.mxu0 %v1543_v43 }
 0x24f   : > { %1257 = vmatpush3.bf16.msra.mxu0 %v819_v50 }
 0x252   : > { %1259 = vmatmul.mubr.bf16.vlgmr.msra.gmra.mxu0 %v818_v52 }
 0x312   : > { %v861_v59 = vpop.f32.mrf.mxu0 }
 0x313   : > { %v867_v60 = vadd.f32 %v861_v59, %v817_v58 }
 0x314   : > { %v1260_v61 = vpop.f32.mrf.mxu0 }
 0x315   : > { %868 = vst [vmem:[#allocation3] sm:$0xff] %v867_v60  ;;  %v876_v51 = vsel %vm875_vm1, %v867_v60, -1e+30 }
 0x316   : > { %v864_v55 = vpop.f32.mrf.mxu0  ;;  %877 = vmax.xlane.f32.xlu0 %v876_v51 }
 0x318   : > { %v1261_v62 = vpop.f32.mrf.mxu0 }
 0x39f   : > { %v878_v53 = vpop.xlane.xlu0 %877 }
 0x3a0   : > { %v879_v57 = vsub.f32 %v876_v51, %v878_v53 }
 0x3a2   : > { %v880_v63 = vmul.f32 1.442695, %v879_v57 }
 0x3a4   : > { %1367 = vpow2.f32 %v880_v63 }
 0x3b1   : > { %v1368_v0 = vpop.eup %1367 }
 0x3b2   : > { %882 = vadd.xlane.f32.xlu0 %v1368_v0 }
 0x43b   : > { %v883_v1 = vpop.xlane.xlu0 %882 }
 0x43c   : > { %1369 = vlog2.f32 %v883_v1 }
 0x449   : > { %v1370_v2 = vpop.eup %1369 }
 0x44a   : > { %v885_v3 = vmul.f32 0.6931472, %v1370_v2 }
 0x44c   : > { %v886_v4 = vsub.f32 %v879_v57, %v885_v3 }
 0x44e   : > { %887 = vst [vmem:[#allocation10] sm:$0xff] %v886_v4 }
 0x44f PF: > { %s1825_s8 = sadd.s32 4294967295, %s1535_s23   ;;  %s1545_s28 = smov [#allocation10]  }
 0x450   : > { %p1780_p8 = scmp.eq.s32.totalorder %s1825_s8, 2  ;;  %s895_s29 = sshll.u32 %s1545_s28, 4  ;;  %s896_s29 = int_to_ptr.vmem [resolvable:$true] %s895_s29 }
 0x451   : > { %s1449_s30 = scalar_lea.vmem %s896_s29, 128  ;;  %p1456_p1 = scmp.lt.s32.totalorder %s896_s29, %s896_s29 }
 0x452   : > { %p1450_p9 = scmp.ne.s32.totalorder %s896_s29, %s1449_s30  ;;  %p1457_p4 = scmp.lt.s32.totalorder %s1449_s30, %s1449_s30 }
 0x454   : > { %p1451_p5 = pnand %p1450_p9, %p1780_p8  ;;  %p1458_p11 = por %p1457_p4, %p1456_p1 }
 0x456   : > { %p1452_p10 = pneg %p1451_p5 }
 0x458   : > { %p1459_p7 = pnand %p1458_p11, %p1452_p10 }
 0x45a   : > { %1462 = shalt.err (!%p1459_p7)
}
 0x45b   : > { %1271 = dma.vmem_to_hbm [thread:$0]  (%p1780_p8), %s896_s29, 128, %s1818_s5, [#allocation7]  }
 0x45c   : > { %1510 = dma.done.wait (%p1780_p8), [#allocation7], 128  }
 0x45d   : > { %1512 = vsyncadd (%p1780_p8), [#allocation7], 4294967168 }
 0x45e PF: > { %s20_s23 = sadd.s32 1, %s1535_s23   ;;  %s1827_s18 = smov %s1519_s19 }
 0x45f   : > { %p17_p12 = scmp.ge.s32.totalorder %s20_s23, 5   ;;  %s1828_s19 = smov %s1523_s20 }
 0x460   : > { %s1829_s20 = smov %s1655_s17  ;;  %s1830_s21 = smov %s1531_s22 }
 0x461   : > { %s1831_s22 = smov %s1833_s6  ;;  %19 = sbr.rel (!%p17_p12) target bundleno = 6 (0x6), region = 111 }
 0x466   :  { %908 = vsyncpa [#allocation6], 1 }
 0x467   :  { %910 = vsyncpa [#allocation6 + $0x1], 1 }
 0x468   :  { %911 = vsyncpa [#allocation9], 1 }
 0x469   :  { %913 = vsyncpa [#allocation9 + $0x1], 1 }
 0x46a   :  { %914 = vsyncpa [#allocation7], 1 }
 0x46b   :  { %916 = vsyncpa [#allocation7 + $0x1], 1 }
 0x46c   :  { %917 = vsyncmov [#allocation4] }
 0x46f   :  { %s918_s10 = vpop.sfrf %917 }
 0x470   :  { %p1068_p13 = scmp.ne.s32.totalorder %s918_s10, 0 }
 0x472   :  { %922 = shalt.err (%p1068_p13)  }

</bundles_post_ra>
